<compile_context>
chip_gen: v6e
topology: v6e:2x2x1
jax: 0.10.0
libtpu: 0.0.40
codegen_flags: <defaults>
</compile_context>

<pallas_src>
import jax
import jax.numpy as jnp
from jax.experimental import pallas as pl
from jax.experimental.pallas import tpu as pltpu


def _fused_matmul_relu_kernel(w_ref, p_ref, o_ref):
    """Single step.

    w_ref : (C_out, KKCp)   BN-scale-folded weights + BN-shift column (+ zero pad)
    p_ref : (KKCp, N*HW)    transposed im2col patches + ones row (+ zero pad)
    o_ref : (C_out, N*HW)   channel-major, lane-dense output
    """
    acc = jnp.dot(w_ref[...], p_ref[...], preferred_element_type=jnp.float32)
    o_ref[...] = jnp.maximum(acc, 0.0).astype(o_ref.dtype)


def conv_norm_layer(x_nchw, weight, gamma, beta, running_mean, running_var,
                    *, stride=1, padding=None, eps=1e-5,
                    compute_dtype=jnp.bfloat16):
    """ConvNormLayer forward.  x_nchw: (N, C_in, H, W) -> (N, C_out, Hout, Wout)."""
    N, C_in, H, W = x_nchw.shape
    C_out, _, K, _ = weight.shape
    p = (K - 1) // 2 if padding is None else padding
    Hout = (H + 2 * p - K) // stride + 1
    Wout = (W + 2 * p - K) // stride + 1
    HW = Hout * Wout
    NHW = N * HW
    KKC = K * K * C_in
    # +1 row for the BN shift / ones, rounded up to a multiple of 16 so the
    # contraction dim is sublane-aligned for both f32 (8) and bf16 (16).
    KKCp = ((KKC + 1 + 15) // 16) * 16

    # ---- host-side glue: padding + transposed im2col (batch in lanes) ----
    xp = jnp.pad(x_nchw, ((0, 0), (0, 0), (p, p), (p, p)))      # (N, C_in, Hp, Wp)
    taps = jnp.stack([
        xp[:, :,
           kh:kh + (Hout - 1) * stride + 1:stride,
           kw:kw + (Wout - 1) * stride + 1:stride]              # (N, C_in, Hout, Wout)
        for kh in range(K) for kw in range(K)
    ], axis=0)                                                  # (K*K, N, C_in, Ho, Wo)
    # row = (kh*K + kw)*C_in + c ; column = n*HW + oh*Wout + ow
    patches = jnp.transpose(taps, (0, 2, 1, 3, 4)).reshape(KKC, NHW)
    patches = jnp.concatenate(
        [patches,
         jnp.ones((1, NHW), patches.dtype),                     # ones row -> BN shift
         jnp.zeros((KKCp - KKC - 1, NHW), patches.dtype)],      # sublane pad
        axis=0)                                                 # (KKCp, NHW)

    # ---- BN folding (in f32), then cast operands to compute_dtype ----
    inv_std = 1.0 / jnp.sqrt(running_var.astype(jnp.float32) + eps)
    scale = gamma.astype(jnp.float32) * inv_std                 # (C_out,)
    shift = beta.astype(jnp.float32) - running_mean.astype(jnp.float32) * scale
    # OIHW -> (K*K*C_in, C_out); row = (kh*K+kw)*C_in + c matches patches.
    w_mat = jnp.transpose(weight.astype(jnp.float32), (2, 3, 1, 0)).reshape(KKC, C_out)
    w_lhs = (w_mat * scale[None, :]).T                          # (C_out, KKC)
    w_lhs = jnp.concatenate(
        [w_lhs,
         shift.reshape(C_out, 1),                               # shift column
         jnp.zeros((C_out, KKCp - KKC - 1), jnp.float32)],      # pad
        axis=1)                                                 # (C_out, KKCp)

    w_lhs = w_lhs.astype(compute_dtype)
    patches = patches.astype(compute_dtype)

    itemsize = jnp.dtype(compute_dtype).itemsize
    cost = pl.CostEstimate(
        flops=2 * C_out * KKCp * NHW,
        transcendentals=0,
        bytes_accessed=(w_lhs.size * itemsize
                        + patches.size * itemsize
                        + C_out * NHW * x_nchw.dtype.itemsize),
    )

    out = pl.pallas_call(
        _fused_matmul_relu_kernel,
        out_shape=jax.ShapeDtypeStruct((C_out, NHW), x_nchw.dtype),
        grid=(1,),
        in_specs=[
            pl.BlockSpec((C_out, KKCp), lambda i: (0, 0)),      # folded weights
            pl.BlockSpec((KKCp, NHW), lambda i: (0, 0)),        # patches (lane-dense RHS)
        ],
        out_specs=pl.BlockSpec((C_out, NHW), lambda i: (0, 0)),
        compiler_params=pltpu.CompilerParams(
            dimension_semantics=("arbitrary",)),
        cost_estimate=cost,
    )(w_lhs, patches)

    # (C_out, N*HW) -> NCHW; this swapaxes moves ~16 KiB at this size.
    return jnp.transpose(out.reshape(C_out, N, Hout, Wout), (1, 0, 2, 3))


def _reference(x_nchw, weight, gamma, beta, running_mean, running_var,
               *, stride=1, padding=1, eps=1e-5):
    y = jax.lax.conv_general_dilated(
        x_nchw, weight, window_strides=(stride, stride),
        padding=[(padding, padding), (padding, padding)],
        dimension_numbers=("NCHW", "OIHW", "NCHW"))
    scale = (gamma / jnp.sqrt(running_var + eps)).reshape(1, -1, 1, 1)
    shift = (beta - running_mean * gamma / jnp.sqrt(running_var + eps)).reshape(1, -1, 1, 1)
    return jnp.maximum(y * scale + shift, 0.0)


if __name__ == "__main__":
    # ConvNormLayer(ch_in=4, ch_out=8, kernel_size=3, stride=1, act='relu')
    N, C_in, C_out, H, W, K = 2, 4, 8, 16, 16, 3

    key = jax.random.PRNGKey(0)
    kx, kw, kg, kb, km, kv = jax.random.split(key, 6)

    x = jax.random.normal(kx, (N, C_in, H, W), dtype=jnp.float32)
    weight = jax.random.normal(kw, (C_out, C_in, K, K), dtype=jnp.float32) * 0.1
    gamma = 1.0 + 0.05 * jax.random.normal(kg, (C_out,), dtype=jnp.float32)
    beta = 0.05 * jax.random.normal(kb, (C_out,), dtype=jnp.float32)
    running_mean = 0.1 * jax.random.normal(km, (C_out,), dtype=jnp.float32)
    running_var = jnp.abs(1.0 + 0.1 * jax.random.normal(kv, (C_out,), dtype=jnp.float32))

    ref = _reference(x, weight, gamma, beta, running_mean, running_var)

    # f32-operand path: strict structural/numerical check.
    out_f32 = jax.block_until_ready(conv_norm_layer(
        x, weight, gamma, beta, running_mean, running_var,
        compute_dtype=jnp.float32))
    assert out_f32.shape == (N, C_out, H, W)
    assert jnp.allclose(out_f32, ref, atol=1e-4, rtol=1e-4)

    # Default bf16-operand / f32-accumulate path: bf16-appropriate tolerance.
    out_bf16 = jax.block_until_ready(conv_norm_layer(
        x, weight, gamma, beta, running_mean, running_var))
    assert out_bf16.shape == (N, C_out, H, W)
    assert jnp.allclose(out_bf16, ref, atol=5e-2, rtol=5e-2)

    print("KERNEL_OK")
</pallas_src>

<mosaic_0001>
module attributes {stable_mosaic.version = 11 : i64} {
  func.func @_fused_matmul_relu_kernel(%arg0: i32, %arg1: memref<8x48xf32, #tpu.memory_space<vmem>>, %arg2: memref<48x512xf32, #tpu.memory_space<vmem>>, %arg3: memref<8x512xf32, #tpu.memory_space<vmem>>) attributes {dimension_semantics = [#tpu.dimension_semantics<arbitrary>], iteration_bounds = array<i64: 1>, scalar_prefetch = 0 : i64, scratch_operands = 0 : i64, tpu.core_type = #tpu.core_type<tc>, window_params = [{pipeline_mode = #tpu.pipeline_mode<synchronous>, transform_indices = @transform_0, window_bounds = array<i64: 8, 48>}, {pipeline_mode = #tpu.pipeline_mode<synchronous>, transform_indices = @transform_1, window_bounds = array<i64: 48, 512>}, {pipeline_mode = #tpu.pipeline_mode<synchronous>, transform_indices = @transform_2, window_bounds = array<i64: 8, 512>}]} {
    %c0 = arith.constant 0 : index
    %c0_0 = arith.constant 0 : index
    %0 = vector.load %arg1[%c0, %c0_0] : memref<8x48xf32, #tpu.memory_space<vmem>>, vector<8x48xf32>
    %c0_1 = arith.constant 0 : index
    %c0_2 = arith.constant 0 : index
    %1 = vector.load %arg2[%c0_1, %c0_2] : memref<48x512xf32, #tpu.memory_space<vmem>>, vector<48x512xf32>
    %cst = arith.constant dense<0.000000e+00> : vector<8x512xf32>
    %2 = tpu.matmul %0, %1, %cst {dimension_numbers = #tpu.dot_dimension_numbers<[1], [0], [0], [1], [0, 0, 1, 1], [], []>} : vector<8x48xf32>, vector<48x512xf32>, vector<8x512xf32> -> vector<8x512xf32>
    %cst_3 = arith.constant 0.000000e+00 : f32
    %3 = vector.broadcast %cst_3 : f32 to vector<8x512xf32>
    %4 = arith.maximumf %2, %3 : vector<8x512xf32>
    %c0_4 = arith.constant 0 : index
    %c0_5 = arith.constant 0 : index
    %5 = vector.load %arg3[%c0_4, %c0_5] : memref<8x512xf32, #tpu.memory_space<vmem>>, vector<8x512xf32>
    tpu.vector_store %arg3[%c0_4, %c0_5], %4 {strides = array<i32>} : memref<8x512xf32, #tpu.memory_space<vmem>>, vector<8x512xf32>,
    return
  }
  func.func @transform_0(%arg0: i32) -> (i32, i32) {
    %c0_i32 = arith.constant 0 : i32
    %c0_i32_0 = arith.constant 0 : i32
    %c0_i32_1 = arith.constant 0 : i32
    return %c0_i32, %c0_i32_0 : i32, i32
  }
  func.func @transform_1(%arg0: i32) -> (i32, i32) {
    %c0_i32 = arith.constant 0 : i32
    %c0_i32_0 = arith.constant 0 : i32
    %c0_i32_1 = arith.constant 0 : i32
    return %c0_i32, %c0_i32_0 : i32, i32
  }
  func.func @transform_2(%arg0: i32) -> (i32, i32) {
    %c0_i32 = arith.constant 0 : i32
    %c0_i32_0 = arith.constant 0 : i32
    %c0_i32_1 = arith.constant 0 : i32
    return %c0_i32, %c0_i32_0 : i32, i32
  }
}

</mosaic_0001>

<bundles_post_ra>
// kernel: tpu_custom_call.1
= control target key start
LH: loop header
LB: loop body
LE: loop exit
PB: predicated region body
PF: predicated region fallthrough
CT: control target
= control target key end

     0   :  { %7 = vsyncpa [#allocation3], 0  ;;  %s337_s0 = inlined_call_operand.hbm [shape: f32[8,48], index: 0, kind: input, shape index: {}]   ;;  %s338_s1 = inlined_call_operand.hbm [shape: f32[48,512], index: 1, kind: input, shape index: {}]   ;;  %s339_s2 = inlined_call_operand.hbm [shape: f32[8,512], index: 2, kind: output, shape index: {}]  }
   0x1   :  { %8 = vsyncpa [#allocation6], 0 }
   0x2   :  { %9 = vsyncpa [#allocation4], 0  ;;  %s307_s9 = smov [#allocation2]   ;;  %s308_s11 = smov [#allocation5]  }
   0x3   :  { %s16_s10 = sshll.u32 %s307_s9, 4  ;;  %s25_s12 = sshll.u32 %s308_s11, 4  ;;  %s17_s10 = int_to_ptr.vmem [resolvable:$true] %s16_s10  ;;  %s26_s12 = int_to_ptr.vmem [resolvable:$true] %s25_s12 }
   0x4   :  { %s249_s13 = scalar_lea.vmem %s17_s10, 128  ;;  %p254_p1 = scmp.lt.s32.totalorder %s17_s10, %s17_s10 }
   0x5   :  { %p250_p0 = scmp.ne.s32.totalorder %s17_s10, %s249_s13  ;;  %p255_p2 = scmp.lt.s32.totalorder %s249_s13, %s249_s13 }
   0x7   :  { %p256_p3 = por %p255_p2, %p254_p1 }
   0x9   :  { %p257_p4 = pnand %p256_p3, %p250_p0 }
   0xb   :  { %260 = shalt.err (!%p257_p4)
}
   0xc   :  { %19 = dma.hbm_to_vmem [thread:$0]  %s337_s0, 128, %s17_s10, [#allocation3]  }
   0xd   :  { %s269_s16 = scalar_lea.vmem %s26_s12, 3072  ;;  %p274_p6 = scmp.lt.s32.totalorder %s26_s12, %s26_s12 }
   0xe   :  { %p270_p5 = scmp.ne.s32.totalorder %s26_s12, %s269_s16  ;;  %p275_p7 = scmp.lt.s32.totalorder %s269_s16, %s269_s16 }
  0x10   :  { %p276_p8 = por %p275_p7, %p274_p6 }
  0x12   :  { %p277_p9 = pnand %p276_p8, %p270_p5 }
  0x14   :  { %280 = shalt.err (!%p277_p9)
}
  0x15   :  { %s309_s17 = smov 512   ;;  %s310_s18 = smov 32  }
  0x16   :  { %31 = dma.hbm_to_vmem [thread:$0]  %s338_s1, 3072, %s26_s12, [#allocation6], %s309_s17, %s309_s17, %s310_s18  }
  0x17   :  { %301 = dma.done.wait [#allocation3], 128  }
  0x18   :  { %302 = vsyncadd [#allocation3], 4294967168 }
  0x19   :  { %303 = dma.done.wait [#allocation6], 3072  }
  0x1a   :  { %304 = vsyncadd [#allocation6], 4294964224  ;;  %v311_v0 = vmov 0.0   ;;  %v60_v1 = vld [vmem:[#allocation5 + $0xa8] sm:$0xff]  ;;  %v62_v2 = vld [vmem:[#allocation5 + $0xb8] sm:$0xff]  ;;  %vm63_vm0 = vcmask 392192  }
  0x1b   :  { %131 = vmatprep.mubr.f32.mxu0 %v311_v0  ;;  %202 = vmatprep.mubr.f32.mxu1 %v311_v0  ;;  %v59_v3 = vld [vmem:[#allocation5 + $0xa0] sm:$0xff]  ;;  %v61_v4 = vld [vmem:[#allocation5 + $0xb0] sm:$0xff]  ;;  %v56_v5 = vld [vmem:[#allocation5 + $0x88] sm:$0xff]  ;;  %s312_s0 = smov [#allocation7]  }
  0x1c   :  { %87 = vmatprep.subr.mxu0 %v60_v1  ;;  %158 = vmatprep.subr.mxu1 %v62_v2  ;;  %v58_v6 = vld [vmem:[#allocation5 + $0x98] sm:$0xff]  ;;  %v55_v7 = vld [vmem:[#allocation5 + $0x80] sm:$0xff]  ;;  %v57_v8 = vld [vmem:[#allocation5 + $0x90] sm:$0xff]  ;;  %s223_s1 = sshll.u32 %s312_s0, 4  ;;  %s224_s1 = int_to_ptr.vmem [resolvable:$true] %s223_s1 }
  0x1d   :  { %88 = vmatpush1.msra.mxu0 %v59_v3  ;;  %159 = vmatpush1.msra.mxu1 %v61_v4  ;;  %v52_v9 = vld [vmem:[#allocation5 + $0x68] sm:$0xff]  ;;  %v54_v10 = vld [vmem:[#allocation5 + $0x78] sm:$0xff]  ;;  %v51_v11 = vld [vmem:[#allocation5 + $0x60] sm:$0xff]  ;;  %s281_s21 = scalar_lea.vmem %s224_s1, 512  ;;  %p286_p11 = scmp.lt.s32.totalorder %s224_s1, %s224_s1 }
  0x1e   :  { %89 = vmatprep.subr.mxu0 %v56_v5  ;;  %160 = vmatprep.subr.mxu1 %v58_v6  ;;  %v53_v12 = vld [vmem:[#allocation5 + $0x70] sm:$0xff]  ;;  %v48_v13 = vld [vmem:[#allocation5 + $0x48] sm:$0xff]  ;;  %v50_v14 = vld [vmem:[#allocation5 + $0x58] sm:$0xff]  ;;  %p282_p10 = scmp.ne.s32.totalorder %s224_s1, %s281_s21  ;;  %p287_p12 = scmp.lt.s32.totalorder %s281_s21, %s281_s21 }
  0x1f   :  { %90 = vmatpush1.msra.mxu0 %v55_v7  ;;  %161 = vmatpush1.msra.mxu1 %v57_v8  ;;  %v47_v15 = vld [vmem:[#allocation5 + $0x40] sm:$0xff]  ;;  %v49_v16 = vld [vmem:[#allocation5 + $0x50] sm:$0xff]  ;;  %v44_v17 = vld [vmem:[#allocation5 + $0x28] sm:$0xff] }
  0x20   :  { %91 = vmatprep.subr.mxu0 %v52_v9  ;;  %162 = vmatprep.subr.mxu1 %v54_v10  ;;  %v46_v18 = vld [vmem:[#allocation5 + $0x38] sm:$0xff]  ;;  %v43_v19 = vld [vmem:[#allocation5 + $0x20] sm:$0xff]  ;;  %v45_v20 = vld [vmem:[#allocation5 + $0x30] sm:$0xff]  ;;  %p288_p13 = por %p287_p12, %p286_p11 }
  0x21   :  { %92 = vmatpush1.msra.mxu0 %v51_v11  ;;  %163 = vmatpush1.msra.mxu1 %v53_v12  ;;  %v40_v21 = vld [vmem:[#allocation5 + $0x8] sm:$0xff]  ;;  %v42_v22 = vld [vmem:[#allocation5 + $0x18] sm:$0xff]  ;;  %v39_v23 = vld [vmem:[#allocation5] sm:$0xff] }
  0x22   :  { %93 = vmatprep.subr.mxu0 %v48_v13  ;;  %164 = vmatprep.subr.mxu1 %v50_v14  ;;  %v41_v24 = vld [vmem:[#allocation5 + $0x10] sm:$0xff]  ;;  %v38_v25 = vld [vmem:[#allocation2] sm:$0xff]  ;;  %p289_p0 = pnand %p288_p13, %p282_p10 }
  0x23   :  { %94 = vmatpush1.msra.mxu0 %v47_v15  ;;  %165 = vmatpush1.msra.mxu1 %v49_v16 }
  0x24   :  { %95 = vmatprep.subr.mxu0 %v44_v17  ;;  %166 = vmatprep.subr.mxu1 %v46_v18 }
  0x25   :  { %96 = vmatpush1.msra.mxu0 %v43_v19  ;;  %167 = vmatpush1.msra.mxu1 %v45_v20 }
  0x26   :  { %97 = vmatprep.subr.mxu0 %v40_v21  ;;  %168 = vmatprep.subr.mxu1 %v42_v22 }
  0x27   :  { %98 = vmatpush1.msra.mxu0 %v39_v23  ;;  %169 = vmatpush1.msra.mxu1 %v41_v24 }
  0x28   :  { %233 = vmatmul.mubr.msk.f32.vlgmr.msra.gmra.mxu0 %vm63_vm0, %v38_v25  ;;  %234 = vmatmul.mubr.msk.f32.vlgmr.msra.gmra.mxu1 %vm63_vm0, %v38_v25 }
  0xe8   :  { %v133_v26 = vpop.f32.mrf.mxu0  ;;  %v204_v27 = vpop.f32.mrf.mxu1 }
  0xe9   :  { %v209_v28 = vmax.f32 %v133_v26, 0.0  ;;  %v211_v29 = vmax.f32 %v204_v27, 0.0 }
  0xea   :  { %v135_v30 = vpop.f32.mrf.mxu0  ;;  %v206_v31 = vpop.f32.mrf.mxu1 }
  0xeb   :  { %213 = vst [vmem:[#allocation7] sm:$0xff] %v209_v28  ;;  %215 = vst [vmem:[#allocation7 + $0x10] sm:$0xff] %v211_v29  ;;  %v210_v32 = vmax.f32 %v135_v30, 0.0  ;;  %v212_v33 = vmax.f32 %v206_v31, 0.0 }
  0xed   :  { %214 = vst [vmem:[#allocation7 + $0x8] sm:$0xff] %v210_v32  ;;  %216 = vst [vmem:[#allocation7 + $0x18] sm:$0xff] %v212_v33 }
  0xee   :  { %292 = shalt.err (!%p289_p0)
}
  0xef   :  { %226 = dma.vmem_to_hbm [thread:$0]  %s224_s1, 512, %s339_s2, [#allocation4]  }
  0xf0   :  { %305 = dma.done.wait [#allocation4], 512  }
  0xf1   :  { %306 = vsyncadd [#allocation4], 4294966784 }
  0xf2   :  { %230 = vsyncpa [#allocation3], 1 }
  0xf3   :  { %231 = vsyncpa [#allocation6], 1 }
  0xf4   :  { %232 = vsyncpa [#allocation4], 1 }

</bundles_post_ra>
